<compile_context>
chip_gen: v5e
topology: v5e:2x2
jax: 0.10.0
libtpu: 0.0.40
codegen_flags: <defaults>
</compile_context>

<pallas_src>
import functools

import jax
import jax.numpy as jnp
from jax.experimental import pallas as pl
from jax.experimental.pallas import tpu as pltpu


def _roll_lanes(a, k):
    """Circular shift along the last (lane) axis: result[..., i] = a[..., (i + k) % n].

    Static slice + concat: unambiguous semantics, lowers to cheap lane
    relayouts on these tiny (Cin, H*W) tiles."""
    n = a.shape[-1]
    k = k % n
    if k == 0:
        return a
    return jnp.concatenate([a[..., k:], a[..., :k]], axis=-1)


def _resblock_kernel(x_ref, dwk_ref, wblk_ref, rb_ref, o_ref, *, H, W):
    # x_ref:    (1, Cin, H*W)   one batch element, spatial flattened on lanes
    # dwk_ref:  (Cin, 9)        depthwise 3x3 weights, tap = dy*3 + dx
    # wblk_ref: (2*Cout, 2*Cin) block-diag [pw.T, 0; 0, rw.T]
    # rb_ref:   (Cout, 1)       resample bias (broadcast along lanes)
    # o_ref:    (1, Cout, H*W)
    Cin = x_ref.shape[1]
    Cout = o_ref.shape[1]
    HW = H * W

    x = x_ref[0].astype(jnp.float32)            # (Cin, HW)
    dwk = dwk_ref[...].astype(jnp.float32)      # (Cin, 9)

    # Column index within each image row (for the circular wrap in W) — the
    # masks depend only on w, so they are shared by all H-direction rolls.
    w_idx = jax.lax.broadcasted_iota(jnp.int32, (Cin, HW), 1) % W
    left_edge = w_idx == 0            # column w == 0     -> neighbour wraps to W-1
    right_edge = w_idx == W - 1       # column w == W - 1 -> neighbour wraps to 0

    # Circular shifts in the W direction (wrap within each row of width W):
    #   x_wm1[p(h,w)] = x[h, (w-1) % W] ;  x_wp1[p(h,w)] = x[h, (w+1) % W]
    x_wm1 = jnp.where(left_edge, _roll_lanes(x, W - 1), _roll_lanes(x, -1))
    x_wp1 = jnp.where(right_edge, _roll_lanes(x, 1 - W), _roll_lanes(x, 1))
    x_w = (x_wm1, x, x_wp1)                     # indexed by dx = 0,1,2

    # Depthwise 3x3 circular conv: 9 shifted VPU FMAs.  A circular shift of the
    # H axis is a plain lane roll by (dy-1)*W on the flattened H*W axis (the
    # flattened wrap IS the circular wrap in H).  Seed the accumulator with the
    # centre tap (dy=1, dx=1) — no zero materialisation, one fewer add.
    acc = x * dwk[:, 4:5]                       # centre tap, (Cin,1) lane-broadcast
    for dy in range(3):
        for dx in range(3):
            if dy == 1 and dx == 1:
                continue
            shifted = _roll_lanes(x_w[dx], (dy - 1) * W)
            tap = dy * 3 + dx
            acc = acc + shifted * dwk[:, tap:tap + 1]

    # Fused 1x1 convs: one MXU matmul, spatial on the matmul N dim (lane-dense).
    stacked = jnp.concatenate([acc, x], axis=0)                     # (2*Cin, HW)
    r = jnp.dot(wblk_ref[...].astype(jnp.float32), stacked,
                preferred_element_type=jnp.float32)                 # (2*Cout, HW)
    y = jnp.maximum(r[:Cout], 0.0) + r[Cout:] + rb_ref[...].astype(jnp.float32)

    o_ref[0] = y.astype(o_ref.dtype)


@jax.jit
def resblock_forward(x_nchw, dw, pw, rw, rb):
    """x_nchw: (N, Cin, H, W).  Returns (N, Cout, H, W) like the PyTorch module."""
    N, Cin, H, W = x_nchw.shape
    Cout = pw.shape[1]
    HW = H * W

    # Free reshape (contiguous, no transpose): spatial goes onto the lane axis.
    x3 = x_nchw.reshape(N, Cin, HW)

    # Tiny weight prep (<=128 floats each — negligible, done once per call).
    dwk = jnp.transpose(dw.reshape(9, Cin), (1, 0))                 # (Cin, 9)
    pwT = jnp.transpose(pw, (1, 0))                                 # (Cout, Cin)
    rwT = jnp.transpose(rw, (1, 0))                                 # (Cout, Cin)
    wblk = jnp.concatenate(
        [jnp.concatenate([pwT, jnp.zeros_like(pwT)], axis=1),
         jnp.concatenate([jnp.zeros_like(rwT), rwT], axis=1)],
        axis=0)                                                     # (2*Cout, 2*Cin)
    rb2 = rb.reshape(Cout, 1)

    kernel = functools.partial(_resblock_kernel, H=H, W=W)

    out3 = pl.pallas_call(
        kernel,
        out_shape=jax.ShapeDtypeStruct((N, Cout, HW), x_nchw.dtype),
        grid_spec=pltpu.PrefetchScalarGridSpec(
            num_scalar_prefetch=0,
            grid=(N,),
            in_specs=[
                pl.BlockSpec((1, Cin, HW), lambda n: (n, 0, 0)),
                pl.BlockSpec((Cin, 9), lambda n: (0, 0)),          # resident
                pl.BlockSpec((2 * Cout, 2 * Cin), lambda n: (0, 0)),  # resident
                pl.BlockSpec((Cout, 1), lambda n: (0, 0)),         # resident
            ],
            out_specs=pl.BlockSpec((1, Cout, HW), lambda n: (n, 0, 0)),
        ),
        compiler_params=pltpu.CompilerParams(
            dimension_semantics=("parallel",)),
    )(x3, dwk, wblk, rb2)

    # Free reshape back to NCHW.
    return out3.reshape(N, Cout, H, W)


def _reference_forward(x_nchw, dw, pw, rw, rb):
    """Pure-JAX reference using lax.conv for validation (NCHW, PyTorch weight layout)."""
    N, Cin, H, W = x_nchw.shape
    Cout = pw.shape[1]
    x32 = x_nchw.astype(jnp.float32)

    # depthwise 3x3, circular padding, groups=Cin, bias=False
    dw_t = jnp.transpose(dw, (2, 0, 1))[:, None, :, :]          # (Cin,1,3,3)
    xpad = jnp.pad(x32, ((0, 0), (0, 0), (1, 1), (1, 1)), mode="wrap")
    y = jax.lax.conv_general_dilated(xpad, dw_t, (1, 1), "VALID",
                                     feature_group_count=Cin)
    # pointwise 1x1, bias=False
    pw_t = jnp.transpose(pw, (1, 0))[:, :, None, None]          # (Cout,Cin,1,1)
    y = jax.lax.conv_general_dilated(y, pw_t, (1, 1), "VALID")
    y = jnp.maximum(y, 0.0)
    # resample 1x1 with bias
    rw_t = jnp.transpose(rw, (1, 0))[:, :, None, None]          # (Cout,Cin,1,1)
    sc = jax.lax.conv_general_dilated(x32, rw_t, (1, 1), "VALID")
    sc = sc + rb[None, :, None, None]
    return y + sc


if __name__ == "__main__":
    # Small shapes consistent with the module: batch=2, Cin=4, Cout=8, 16x16.
    N, Cin, Cout, H, W = 2, 4, 8, 16, 16

    key = jax.random.PRNGKey(0)
    kx, k1, k2, k3, k4 = jax.random.split(key, 5)

    x = jax.random.normal(kx, (N, Cin, H, W), dtype=jnp.float32)

    # Deterministic synthetic parameters (shapes per nn.Conv2d in __init__):
    dw = jax.random.normal(k1, (3, 3, Cin), dtype=jnp.float32) * 0.2   # depthwise 3x3
    pw = jax.random.normal(k2, (Cin, Cout), dtype=jnp.float32) * 0.2   # 1x1, bias=False
    rw = jax.random.normal(k3, (Cin, Cout), dtype=jnp.float32) * 0.2   # resample 1x1 weight
    rb = jax.random.normal(k4, (Cout,), dtype=jnp.float32) * 0.1       # resample 1x1 bias

    out = jax.block_until_ready(resblock_forward(x, dw, pw, rw, rb))

    ref = _reference_forward(x, dw, pw, rw, rb)
    assert out.shape == (N, Cout, H, W)
    assert jnp.allclose(out, ref, atol=1e-4, rtol=1e-4), "mismatch vs reference"

    print("KERNEL_OK")
</pallas_src>

<mosaic_0001>
module attributes {stable_mosaic.version = 11 : i64} {
  func.func @_resblock_kernel(%arg0: i32, %arg1: memref<1x4x256xf32, #tpu.memory_space<vmem>>, %arg2: memref<4x9xf32, #tpu.memory_space<vmem>>, %arg3: memref<16x8xf32, #tpu.memory_space<vmem>>, %arg4: memref<8x1xf32, #tpu.memory_space<vmem>>, %arg5: memref<1x8x256xf32, #tpu.memory_space<vmem>>) attributes {dimension_semantics = [#tpu.dimension_semantics<parallel>], iteration_bounds = array<i64: 2>, scalar_prefetch = 0 : i64, scratch_operands = 0 : i64, tpu.core_type = #tpu.core_type<tc>, window_params = [{transform_indices = @transform_0, window_bounds = array<i64: 1, 4, 256>}, {pipeline_mode = #tpu.pipeline_mode<synchronous>, transform_indices = @transform_1, window_bounds = array<i64: 4, 9>}, {pipeline_mode = #tpu.pipeline_mode<synchronous>, transform_indices = @transform_2, window_bounds = array<i64: 16, 8>}, {pipeline_mode = #tpu.pipeline_mode<synchronous>, transform_indices = @transform_3, window_bounds = array<i64: 8, 1>}, {transform_indices = @transform_4, window_bounds = array<i64: 1, 8, 256>}]} {
    %c0 = arith.constant 0 : index
    %c0_0 = arith.constant 0 : index
    %c0_1 = arith.constant 0 : index
    %0 = vector.load %arg1[%c0, %c0_0, %c0_1] : memref<1x4x256xf32, #tpu.memory_space<vmem>>, vector<1x4x256xf32>
    %1 = vector.shape_cast %0 : vector<1x4x256xf32> to vector<4x256xf32>
    %c0_2 = arith.constant 0 : index
    %c0_3 = arith.constant 0 : index
    %2 = vector.load %arg2[%c0_2, %c0_3] : memref<4x9xf32, #tpu.memory_space<vmem>>, vector<4x9xf32>
    %3 = tpu.iota {dimensions = array<i32: 1>} : vector<4x256xi32>
    %c16_i32 = arith.constant 16 : i32
    %c0_i32 = arith.constant 0 : i32
    %4 = arith.cmpi eq, %c16_i32, %c0_i32 : i32
    %c1_i32 = arith.constant 1 : i32
    %5 = arith.select %4, %c1_i32, %c16_i32 : i32
    %6 = vector.broadcast %5 : i32 to vector<4x256xi32>
    %7 = arith.remsi %3, %6 : vector<4x256xi32>
    %c0_i32_4 = arith.constant 0 : i32
    %8 = vector.broadcast %c0_i32_4 : i32 to vector<4x256xi32>
    %9 = arith.cmpi ne, %7, %8 : vector<4x256xi32>
    %c0_i32_5 = arith.constant 0 : i32
    %10 = vector.broadcast %c0_i32_5 : i32 to vector<4x256xi32>
    %11 = arith.cmpi slt, %7, %10 : vector<4x256xi32>
    %c0_i32_6 = arith.constant 0 : i32
    %12 = arith.cmpi slt, %5, %c0_i32_6 : i32
    %13 = vector.broadcast %12 : i1 to vector<4x256xi1>
    %14 = vector.broadcast %13 : vector<4x256xi1> to vector<4x256xi1>
    %15 = arith.xori %11, %14 : vector<4x256xi1>
    %16 = arith.andi %15, %9 : vector<4x256xi1>
    %17 = vector.broadcast %5 : i32 to vector<4x256xi32>
    %18 = arith.addi %7, %17 : vector<4x256xi32>
    %19 = arith.select %16, %18, %7 : vector<4x256xi1>, vector<4x256xi32>
    %c0_i32_7 = arith.constant 0 : i32
    %20 = vector.broadcast %c0_i32_7 : i32 to vector<4x256xi32>
    %21 = arith.cmpi eq, %19, %20 : vector<4x256xi32>
    %c15_i32 = arith.constant 15 : i32
    %22 = vector.broadcast %c15_i32 : i32 to vector<4x256xi32>
    %23 = arith.cmpi eq, %19, %22 : vector<4x256xi32>
    %24 = vector.extract_strided_slice %1 {offsets = [0, 15], sizes = [4, 241], strides = [1, 1]} : vector<4x256xf32> to vector<4x241xf32>
    %25 = vector.extract_strided_slice %1 {offsets = [0, 0], sizes = [4, 15], strides = [1, 1]} : vector<4x256xf32> to vector<4x15xf32>
    %26 = tpu.concatenate %24, %25 in 1 : vector<4x241xf32>, vector<4x15xf32> -> vector<4x256xf32>
    %27 = vector.extract_strided_slice %1 {offsets = [0, 255], sizes = [4, 1], strides = [1, 1]} : vector<4x256xf32> to vector<4x1xf32>
    %28 = vector.extract_strided_slice %1 {offsets = [0, 0], sizes = [4, 255], strides = [1, 1]} : vector<4x256xf32> to vector<4x255xf32>
    %29 = tpu.concatenate %27, %28 in 1 : vector<4x1xf32>, vector<4x255xf32> -> vector<4x256xf32>
    %30 = arith.select %21, %26, %29 : vector<4x256xi1>, vector<4x256xf32>
    %31 = vector.extract_strided_slice %1 {offsets = [0, 241], sizes = [4, 15], strides = [1, 1]} : vector<4x256xf32> to vector<4x15xf32>
    %32 = vector.extract_strided_slice %1 {offsets = [0, 0], sizes = [4, 241], strides = [1, 1]} : vector<4x256xf32> to vector<4x241xf32>
    %33 = tpu.concatenate %31, %32 in 1 : vector<4x15xf32>, vector<4x241xf32> -> vector<4x256xf32>
    %34 = vector.extract_strided_slice %1 {offsets = [0, 1], sizes = [4, 255], strides = [1, 1]} : vector<4x256xf32> to vector<4x255xf32>
    %35 = vector.extract_strided_slice %1 {offsets = [0, 0], sizes = [4, 1], strides = [1, 1]} : vector<4x256xf32> to vector<4x1xf32>
    %36 = tpu.concatenate %34, %35 in 1 : vector<4x255xf32>, vector<4x1xf32> -> vector<4x256xf32>
    %37 = arith.select %23, %33, %36 : vector<4x256xi1>, vector<4x256xf32>
    %38 = vector.extract_strided_slice %2 {offsets = [0, 4], sizes = [4, 1], strides = [1, 1]} : vector<4x9xf32> to vector<4x1xf32>
    %39 = vector.broadcast %38 : vector<4x1xf32> to vector<4x256xf32>
    %40 = arith.mulf %1, %39 : vector<4x256xf32>
    %41 = vector.extract_strided_slice %30 {offsets = [0, 240], sizes = [4, 16], strides = [1, 1]} : vector<4x256xf32> to vector<4x16xf32>
    %42 = vector.extract_strided_slice %30 {offsets = [0, 0], sizes = [4, 240], strides = [1, 1]} : vector<4x256xf32> to vector<4x240xf32>
    %43 = tpu.concatenate %41, %42 in 1 : vector<4x16xf32>, vector<4x240xf32> -> vector<4x256xf32>
    %44 = vector.extract_strided_slice %2 {offsets = [0, 0], sizes = [4, 1], strides = [1, 1]} : vector<4x9xf32> to vector<4x1xf32>
    %45 = vector.broadcast %44 : vector<4x1xf32> to vector<4x256xf32>
    %46 = arith.mulf %43, %45 : vector<4x256xf32>
    %47 = arith.addf %40, %46 : vector<4x256xf32>
    %48 = vector.extract_strided_slice %1 {offsets = [0, 240], sizes = [4, 16], strides = [1, 1]} : vector<4x256xf32> to vector<4x16xf32>
    %49 = vector.extract_strided_slice %1 {offsets = [0, 0], sizes = [4, 240], strides = [1, 1]} : vector<4x256xf32> to vector<4x240xf32>
    %50 = tpu.concatenate %48, %49 in 1 : vector<4x16xf32>, vector<4x240xf32> -> vector<4x256xf32>
    %51 = vector.extract_strided_slice %2 {offsets = [0, 1], sizes = [4, 1], strides = [1, 1]} : vector<4x9xf32> to vector<4x1xf32>
    %52 = vector.broadcast %51 : vector<4x1xf32> to vector<4x256xf32>
    %53 = arith.mulf %50, %52 : vector<4x256xf32>
    %54 = arith.addf %47, %53 : vector<4x256xf32>
    %55 = vector.extract_strided_slice %37 {offsets = [0, 240], sizes = [4, 16], strides = [1, 1]} : vector<4x256xf32> to vector<4x16xf32>
    %56 = vector.extract_strided_slice %37 {offsets = [0, 0], sizes = [4, 240], strides = [1, 1]} : vector<4x256xf32> to vector<4x240xf32>
    %57 = tpu.concatenate %55, %56 in 1 : vector<4x16xf32>, vector<4x240xf32> -> vector<4x256xf32>
    %58 = vector.extract_strided_slice %2 {offsets = [0, 2], sizes = [4, 1], strides = [1, 1]} : vector<4x9xf32> to vector<4x1xf32>
    %59 = vector.broadcast %58 : vector<4x1xf32> to vector<4x256xf32>
    %60 = arith.mulf %57, %59 : vector<4x256xf32>
    %61 = arith.addf %54, %60 : vector<4x256xf32>
    %62 = vector.extract_strided_slice %2 {offsets = [0, 3], sizes = [4, 1], strides = [1, 1]} : vector<4x9xf32> to vector<4x1xf32>
    %63 = vector.broadcast %62 : vector<4x1xf32> to vector<4x256xf32>
    %64 = arith.mulf %30, %63 : vector<4x256xf32>
    %65 = arith.addf %61, %64 : vector<4x256xf32>
    %66 = vector.extract_strided_slice %2 {offsets = [0, 5], sizes = [4, 1], strides = [1, 1]} : vector<4x9xf32> to vector<4x1xf32>
    %67 = vector.broadcast %66 : vector<4x1xf32> to vector<4x256xf32>
    %68 = arith.mulf %37, %67 : vector<4x256xf32>
    %69 = arith.addf %65, %68 : vector<4x256xf32>
    %70 = vector.extract_strided_slice %30 {offsets = [0, 16], sizes = [4, 240], strides = [1, 1]} : vector<4x256xf32> to vector<4x240xf32>
    %71 = vector.extract_strided_slice %30 {offsets = [0, 0], sizes = [4, 16], strides = [1, 1]} : vector<4x256xf32> to vector<4x16xf32>
    %72 = tpu.concatenate %70, %71 in 1 : vector<4x240xf32>, vector<4x16xf32> -> vector<4x256xf32>
    %73 = vector.extract_strided_slice %2 {offsets = [0, 6], sizes = [4, 1], strides = [1, 1]} : vector<4x9xf32> to vector<4x1xf32>
    %74 = vector.broadcast %73 : vector<4x1xf32> to vector<4x256xf32>
    %75 = arith.mulf %72, %74 : vector<4x256xf32>
    %76 = arith.addf %69, %75 : vector<4x256xf32>
    %77 = vector.extract_strided_slice %1 {offsets = [0, 16], sizes = [4, 240], strides = [1, 1]} : vector<4x256xf32> to vector<4x240xf32>
    %78 = vector.extract_strided_slice %1 {offsets = [0, 0], sizes = [4, 16], strides = [1, 1]} : vector<4x256xf32> to vector<4x16xf32>
    %79 = tpu.concatenate %77, %78 in 1 : vector<4x240xf32>, vector<4x16xf32> -> vector<4x256xf32>
    %80 = vector.extract_strided_slice %2 {offsets = [0, 7], sizes = [4, 1], strides = [1, 1]} : vector<4x9xf32> to vector<4x1xf32>
    %81 = vector.broadcast %80 : vector<4x1xf32> to vector<4x256xf32>
    %82 = arith.mulf %79, %81 : vector<4x256xf32>
    %83 = arith.addf %76, %82 : vector<4x256xf32>
    %84 = vector.extract_strided_slice %37 {offsets = [0, 16], sizes = [4, 240], strides = [1, 1]} : vector<4x256xf32> to vector<4x240xf32>
    %85 = vector.extract_strided_slice %37 {offsets = [0, 0], sizes = [4, 16], strides = [1, 1]} : vector<4x256xf32> to vector<4x16xf32>
    %86 = tpu.concatenate %84, %85 in 1 : vector<4x240xf32>, vector<4x16xf32> -> vector<4x256xf32>
    %87 = vector.extract_strided_slice %2 {offsets = [0, 8], sizes = [4, 1], strides = [1, 1]} : vector<4x9xf32> to vector<4x1xf32>
    %88 = vector.broadcast %87 : vector<4x1xf32> to vector<4x256xf32>
    %89 = arith.mulf %86, %88 : vector<4x256xf32>
    %90 = arith.addf %83, %89 : vector<4x256xf32>
    %91 = tpu.concatenate %90, %1 in 0 : vector<4x256xf32>, vector<4x256xf32> -> vector<8x256xf32>
    %c0_8 = arith.constant 0 : index
    %c0_9 = arith.constant 0 : index
    %92 = vector.load %arg3[%c0_8, %c0_9] : memref<16x8xf32, #tpu.memory_space<vmem>>, vector<16x8xf32>
    %cst = arith.constant dense<0.000000e+00> : vector<16x256xf32>
    %93 = tpu.matmul %92, %91, %cst {dimension_numbers = #tpu.dot_dimension_numbers<[1], [0], [0], [1], [0, 0, 1, 1], [], []>} : vector<16x8xf32>, vector<8x256xf32>, vector<16x256xf32> -> vector<16x256xf32>
    %94 = vector.extract_strided_slice %93 {offsets = [0, 0], sizes = [8, 256], strides = [1, 1]} : vector<16x256xf32> to vector<8x256xf32>
    %cst_10 = arith.constant 0.000000e+00 : f32
    %95 = vector.broadcast %cst_10 : f32 to vector<8x256xf32>
    %96 = arith.maximumf %94, %95 : vector<8x256xf32>
    %97 = vector.extract_strided_slice %93 {offsets = [8, 0], sizes = [8, 256], strides = [1, 1]} : vector<16x256xf32> to vector<8x256xf32>
    %98 = arith.addf %96, %97 : vector<8x256xf32>
    %c0_11 = arith.constant 0 : index
    %c0_12 = arith.constant 0 : index
    %99 = vector.load %arg4[%c0_11, %c0_12] : memref<8x1xf32, #tpu.memory_space<vmem>>, vector<8x1xf32>
    %100 = vector.broadcast %99 : vector<8x1xf32> to vector<8x256xf32>
    %101 = arith.addf %98, %100 : vector<8x256xf32>
    %c0_13 = arith.constant 0 : index
    %c0_14 = arith.constant 0 : index
    %c0_15 = arith.constant 0 : index
    %102 = vector.load %arg5[%c0_13, %c0_14, %c0_15] : memref<1x8x256xf32, #tpu.memory_space<vmem>>, vector<1x8x256xf32>
    %103 = vector.shape_cast %102 : vector<1x8x256xf32> to vector<8x256xf32>
    %104 = vector.shape_cast %101 : vector<8x256xf32> to vector<1x8x256xf32>
    tpu.vector_store %arg5[%c0_13, %c0_14, %c0_15], %104 {strides = array<i32>} : memref<1x8x256xf32, #tpu.memory_space<vmem>>, vector<1x8x256xf32>,
    return
  }
  func.func @transform_0(%arg0: i32) -> (i32, i32, i32) {
    %c0_i32 = arith.constant 0 : i32
    %c0_i32_0 = arith.constant 0 : i32
    %c0_i32_1 = arith.constant 0 : i32
    return %arg0, %c0_i32, %c0_i32_0 : i32, i32, i32
  }
  func.func @transform_1(%arg0: i32) -> (i32, i32) {
    %c0_i32 = arith.constant 0 : i32
    %c0_i32_0 = arith.constant 0 : i32
    %c0_i32_1 = arith.constant 0 : i32
    return %c0_i32, %c0_i32_0 : i32, i32
  }
  func.func @transform_2(%arg0: i32) -> (i32, i32) {
    %c0_i32 = arith.constant 0 : i32
    %c0_i32_0 = arith.constant 0 : i32
    %c0_i32_1 = arith.constant 0 : i32
    return %c0_i32, %c0_i32_0 : i32, i32
  }
  func.func @transform_3(%arg0: i32) -> (i32, i32) {
    %c0_i32 = arith.constant 0 : i32
    %c0_i32_0 = arith.constant 0 : i32
    %c0_i32_1 = arith.constant 0 : i32
    return %c0_i32, %c0_i32_0 : i32, i32
  }
  func.func @transform_4(%arg0: i32) -> (i32, i32, i32) {
    %c0_i32 = arith.constant 0 : i32
    %c0_i32_0 = arith.constant 0 : i32
    %c0_i32_1 = arith.constant 0 : i32
    return %arg0, %c0_i32, %c0_i32_0 : i32, i32, i32
  }
}

</mosaic_0001>

<bundles_post_ra>
// kernel: resblock_forward.1
= control target key start
LH: loop header
LB: loop body
LE: loop exit
PB: predicated region body
PF: predicated region fallthrough
CT: control target
= control target key end

     0   :  { %s726_s15 = smov 0   ;;  %s833_s0 = inlined_call_operand.vmem [shape: f32[2,4,256], index: 0, kind: input, shape index: {}]   ;;  %s834_s1 = inlined_call_operand.vmem [shape: f32[4,9], index: 1, kind: input, shape index: {}]   ;;  %s835_s2 = inlined_call_operand.vmem [shape: f32[16,8], index: 2, kind: input, shape index: {}]   ;;  %s836_s3 = inlined_call_operand.vmem [shape: f32[8,1], index: 3, kind: input, shape index: {}]   ;;  %s837_s4 = inlined_call_operand.vmem [shape: f32[2,8,256], index: 4, kind: output, shape index: {}]  }
   0x1 LB: > { %s623_s16 = sadd.s32 4294967295, %s683_s15   ;;  %p627_p0 = scmp.ge.s32.totalorder %s683_s15, 1  ;;  %s683_s15 = sphi %s726_s15, %s14_s15  }
   0x2   : > { %p162_p1 = scmp.lt.s32.totalorder %s683_s15, 3 }
   0x4   : > { %p163_p2 = pnand %p627_p0, %p162_p1 }
   0x5   : > { %p188_p3 = scmp.lt.s32.totalorder (!%p163_p2), %s623_s16, 1  ;;  %s688_s23 = smov (!%p163_p2), 113  }
   0x6   : > { %166 = sbr.rel (%p163_p2) target bundleno = 484 (0x1e4), region = 36  ;;  %s689_s24 = smov (!%p163_p2), 1  }
   0x7   : > { %s692_s25 = smov (!%p163_p2), 15   ;;  %s694_s26 = smov (!%p163_p2), 127  }
   0x8   : > { %s695_s27 = smov (!%p163_p2), 16   ;;  %s697_s28 = smov (!%p163_p2), 112  }
   0xb   : > { %v737_v0 = vld [vmem:[%s834_s1] sm:$0xf]  ;;  %v685_v1 = vmov 1   ;;  %v686_v2 = vmov 0   ;;  %s839_s16 = smov (!%p188_p3, %s623_s16), 1  ;;  %v687_v3 = vmov 4   ;;  %v200_v26 = vlaneseq }
   0xc   : > { %668 = vset.pattern.permute.xlu1 %v685_v1  ;;  %666 = vset.pattern.permute.xlu2 %v686_v2  ;;  %s638_s19 = sshll.u32 %s839_s16, 3  ;;  %v690_v9 = vmov 5   ;;  %v691_v12 = vmov 3   ;;  %v693_v14 = vmov 2   ;;  %v696_v23 = vmov 6   ;;  %s639_s9 = sshll.u32 %s839_s16, 4 }
   0xd   : > { %356 = vperm.xlu1 %668, %v737_v0   ;;  %327 = vperm.xlu2 %666, %v737_v0   ;;  %s192_s22 = scalar_lea.vmem %s833_s0, %s638_s19  ;;  %v201_v27 = vand.u32 127, %v200_v26  ;;  %vm239_vm0 = vcmask 924672   ;;  %vm261_vm1 = vcmask 7168   ;;  %v698_v38 = vmov 7   ;;  %s197_s12 = scalar_lea.vmem %s837_s4, %s639_s9 }
   0xe   : > { %667 = vset.pattern.permute.xlu0 %v687_v3  ;;  %v748_v4 = vld [vmem:[%s192_s22] sm:$0xff]  ;;  %v699_v47 = vmov 8   ;;  %vm280_vm4 = vcmask 121856   ;;  %vm292_vm5 = vcmask 1039360   ;;  %vm335_vm8 = vcmask 1043456  }
   0xf   : > { %232 = vst [vmem:[#allocation1] ss:$2 sm:$0xff] %v748_v4  ;;  %v202_v31 = vadd.s32 128, %v201_v27  ;;  %v207_v39 = vand.u32 15, %v201_v27  ;;  %vm321_vm9 = vcmask 130048   ;;  %vm418_vm10 = vcmask 916480  }
  0x10   : > { %vm501_vm11 = vcmask 64512  }
  0x11   : > { %v214_v32 = vand.u32 15, %v202_v31  ;;  %vm227_vm3 = vcmp.eq.s32.totalorder %v207_v39, 0  ;;  %vm229_vm7 = vcmp.eq.s32.totalorder %v207_v39, 15 }
  0x13   : > { %vm228_vm2 = vcmp.eq.s32.totalorder %v214_v32, 0  ;;  %vm230_vm6 = vcmp.eq.s32.totalorder %v214_v32, 15 }
  0x15   : > { %671 = vset.pattern.permute.xlu1 %v690_v9  ;;  %669 = vset.pattern.permute.xlu2 %v693_v14 }
  0x16   : > { %v233_v5 = vld.sshfl [vmem:[#allocation1] sm:$0xff pattern:$0x75316420]  ;;  %v234_v6 = vld.sshfl [vmem:[#allocation1 + $0x8] sm:$0xff pattern:$0x75316420] }
  0x17   : > { %235 = vrot.lane.b32.xlu0 %v233_v5, %s688_s23  ;;  %243 = vst [vmem:[#allocation1] ss:$2 sm:$0xff] %v748_v4 }
  0x1e   : > { %v244_v7 = vld.sshfl [vmem:[#allocation1] sm:$0xff pattern:$0x75316420] }
  0x1f   : > { %245 = vrot.lane.b32.xlu1 %v244_v7, %s688_s23  ;;  %249 = vst [vmem:[#allocation1] ss:$2 sm:$0xff] %v748_v4  ;;  %237 = vrot.lane.b32.xlu0 %v234_v6, %s688_s23 }
  0x26   : > { %v250_v8 = vld.sshfl [vmem:[#allocation1 + $0x8] sm:$0xff pattern:$0x75316420] }
  0x27   : > { %251 = vrot.lane.b32.xlu1 %v250_v8, %s689_s24  ;;  %254 = vst [vmem:[#allocation1] ss:$2 sm:$0xff] %v748_v4  ;;  %306 = vperm.xlu0 %667, %v737_v0  }
  0x2e   : > { %v255_v10 = vld.sshfl [vmem:[#allocation1] sm:$0xff pattern:$0x75316420]  ;;  %v256_v11 = vld.sshfl [vmem:[#allocation1 + $0x8] sm:$0xff pattern:$0x75316420] }
  0x2f   : > { %257 = vrot.lane.b32.xlu2 %v255_v10, %s689_s24  ;;  %268 = vst [vmem:[#allocation1] ss:$2 sm:$0xff] %v748_v4  ;;  %670 = vset.pattern.permute.xlu0 %v691_v12 }
  0x36   : > { %v269_v13 = vld.sshfl [vmem:[#allocation1 + $0x8] sm:$0xff pattern:$0x75316420] }
  0x37   : > { %259 = vrot.lane.b32.xlu2 %v256_v11, %s689_s24  ;;  %270 = vrot.lane.b32.xlu0 %v269_v13, %s692_s25  ;;  %273 = vst [vmem:[#allocation1] ss:$2 sm:$0xff] %v748_v4 }
  0x3e   : > { %v274_v15 = vld.sshfl [vmem:[#allocation1] sm:$0xff pattern:$0x75316420]  ;;  %v275_v16 = vld.sshfl [vmem:[#allocation1 + $0x8] sm:$0xff pattern:$0x75316420] }
  0x3f   : > { %276 = vrot.lane.b32.xlu1 %v274_v15, %s692_s25  ;;  %285 = vst [vmem:[#allocation1] ss:$2 sm:$0xff] %v748_v4  ;;  %278 = vrot.lane.b32.xlu2 %v275_v16, %s692_s25 }
  0x46   : > { %v287_v17 = vld.sshfl [vmem:[#allocation1 + $0x8] sm:$0xff pattern:$0x75316420]  ;;  %v286_v18 = vld.sshfl [vmem:[#allocation1] sm:$0xff pattern:$0x75316420] }
  0x47   : > { %290 = vrot.lane.b32.xlu1 %v287_v17, %s694_s26  ;;  %288 = vrot.lane.b32.xlu0 %v286_v18, %s694_s26  ;;  %296 = vst [vmem:[#allocation1] ss:$2 sm:$0xff] %v748_v4  ;;  %v700_v17 = vmov 839922192  }
  0x48   : > { %v309_v18 = vunpack.c.l.s4 %v700_v17 }
  0x4e   : > { %v297_v19 = vld.sshfl [vmem:[#allocation1] sm:$0xff pattern:$0x75316420] }
  0x4f   : > { %403 = vperm.xlu1 %671, %v737_v0   ;;  %391 = vperm.xlu0 %670, %v737_v0   ;;  %339 = vst [vmem:[#allocation1] ss:$2 sm:$0xff] %v748_v4 }
  0x50   : > { %298 = vrot.lane.b32.xlu2 %v297_v19, %s694_s26 }
  0x56   : > { %v340_v20 = vld.sshfl [vmem:[#allocation1 + $0x8] sm:$0xff pattern:$0x75316420] }
  0x57   : > { %344 = vst [vmem:[#allocation1] ss:$2 sm:$0xff] %v748_v4  ;;  %675 = vset.pattern.permute.xlu1 %v686_v2  ;;  %674 = vset.pattern.permute.xlu0 %v699_v47 }
  0x58   : > { %379 = vperm.xlu2 %669, %v737_v0  }
  0x5e   : > { %v345_v21 = vld.sshfl [vmem:[#allocation1] sm:$0xff pattern:$0x75316420]  ;;  %v346_v22 = vld.sshfl [vmem:[#allocation1 + $0x8] sm:$0xff pattern:$0x75316420] }
  0x5f   : > { %347 = vrot.lane.b32.xlu1 %v345_v21, %s695_s27  ;;  %436 = vst [vmem:[#allocation1] ss:$2 sm:$0xff] %v748_v4 }
  0x60   : > { %672 = vset.pattern.permute.xlu2 %v696_v23 }
  0x61   : > { %425 = vperm.xlu2 %672, %v737_v0  }
  0x66   : > { %v438_v24 = vld.sshfl [vmem:[#allocation1 + $0x8] sm:$0xff pattern:$0x75316420]  ;;  %v437_v45 = vld.sshfl [vmem:[#allocation1] sm:$0xff pattern:$0x75316420] }
  0x67   : > { %441 = vrot.lane.b32.xlu0 %v438_v24, %s697_s28  ;;  %v771_v25 = vpop.permute.xlu2 %327  ;;  %446 = vst [vmem:[#allocation1] ss:$2 sm:$0xff] %v748_v4 }
  0x69   : > { %341 = vrot.lane.b32.xlu2 %v340_v20, %s695_s27 }
  0x6a   : > { %673 = vset.pattern.permute.xlu2 %v698_v38 }
  0x6e   : > { %v447_v62 = vld.sshfl [vmem:[#allocation1] sm:$0xff pattern:$0x75316420] }
  0x71   : > { %349 = vrot.lane.b32.xlu2 %v346_v22, %s695_s27  ;;  %v310_v22 = vunpack.c.0.s8 %v309_v18 }
  0x7f   : > { %v773_v28 = vpop.permute.xlu1 %356 }
  0x89   : > { %v236_v29 = vpop.permute.xlu0 %235  ;;  %v258_v30 = vpop.permute.xlu2 %257 }
  0x91   : > { %v246_v33 = vpop.permute.xlu1 %245  ;;  %v238_v34 = vpop.permute.xlu0 %237 }
  0x92   : > { %v248_v35 = vsel %vm239_vm0, %v238_v34, %v246_v33  ;;  %v260_v36 = vpop.permute.xlu2 %259  ;;  %v240_v41 = vsel %vm239_vm0, %v236_v29, %v238_v34 }
  0x93   : > { %v262_v37 = vsel %vm261_vm1, %v258_v30, %v260_v36 }
  0x94   : > { %v267_v40 = vsel %vm228_vm2, %v248_v35, %v262_v37 }
  0x95   : > { %315 = vrot.lane.b32.xlu0 %v267_v40, %s695_s27 }
  0x99   : > { %v252_v42 = vpop.permute.xlu1 %251  ;;  %v307_v46 = vpop.permute.xlu0 %306 }
  0x9a   : > { %v265_v43 = vsel %vm261_vm1, %v252_v42, %v258_v30  ;;  %v279_v48 = vpop.permute.xlu2 %278  ;;  %v311_v26 = vperm.slane %v307_v46, %v310_v22  ;;  %v499_v22 = vld [vmem:[%s835_s2] sm:$0xff] }
  0x9b   : > { %v266_v44 = vsel %vm227_vm3, %v240_v41, %v265_v43 }
  0x9c   : > { %414 = vrot.lane.b32.xlu2 %v266_v44, %s697_s28  ;;  %319 = vrot.lane.b32.xlu1 %v266_v44, %s695_s27  ;;  %v313_v32 = vmul.f32 %v311_v26, %v748_v4 }
  0xa4   : > { %416 = vrot.lane.b32.xlu1 %v267_v40, %s697_s28  ;;  %453 = vperm.xlu2 %673, %v737_v0  }
  0xa9   : > { %v271_v49 = vpop.permute.xlu0 %270 }
  0xaa   : > { %v299_v51 = vpop.permute.xlu2 %298 }
  0xb1   : > { %v277_v50 = vpop.permute.xlu1 %276 }
  0xb2   : > { %v281_v54 = vsel %vm280_vm4, %v277_v50, %v279_v48  ;;  %v284_v55 = vsel %vm280_vm4, %v271_v49, %v277_v50  ;;  %v380_v10 = vpop.permute.xlu2 %379 }
  0xb9   : > { %v291_v52 = vpop.permute.xlu1 %290  ;;  %v289_v53 = vpop.permute.xlu0 %288 }
  0xba   : > { %v301_v56 = vsel %vm292_vm5, %v291_v52, %v299_v51  ;;  %v293_v57 = vsel %vm292_vm5, %v289_v53, %v291_v52 }
  0xbb   : > { %v303_v58 = vsel %vm230_vm6, %v281_v54, %v301_v56  ;;  %v302_v59 = vsel %vm229_vm7, %v284_v55, %v293_v57  ;;  %v426_v11 = vpop.permute.xlu2 %425 }
  0xbc   : > { %466 = vrot.lane.b32.xlu2 %v303_v58, %s697_s28  ;;  %372 = vrot.lane.b32.xlu1 %v302_v59, %s695_s27 }
  0xbd   : > { %368 = vrot.lane.b32.xlu0 %v303_v58, %s695_s27 }
  0xc1   : > { %v404_v60 = vpop.permute.xlu1 %403  ;;  %v392_v61 = vpop.permute.xlu0 %391 }
  0xc2   : > { %v407_v63 = vmul.f32 %v404_v60, %v303_v58  ;;  %v395_v1 = vmul.f32 %v392_v61, %v267_v40  ;;  %v406_v3 = vmul.f32 %v404_v60, %v302_v59  ;;  %v394_v6 = vmul.f32 %v392_v61, %v266_v44  ;;  %v558_v58 = vld [vmem:[%s836_s3] sm:$0xff] }
  0xc3   : > { %v342_v14 = vpop.permute.xlu2 %341 }
  0xc4   : > { %v410_v5 = vrot.slane %v407_v63, 4  ;;  %v398_v7 = vrot.slane %v395_v1, 4  ;;  %448 = vrot.lane.b32.xlu1 %v447_v62, %s697_s28 }
  0xc5   : > { %439 = vrot.lane.b32.xlu0 %v437_v45, %s697_s28 }
  0xc6   : > { %v411_v8 = vsel %vm335_vm8, %v406_v3, %v410_v5  ;;  %v399_v9 = vsel %vm335_vm8, %v394_v6, %v398_v7 }
  0xcb   : > { %v350_v20 = vpop.permute.xlu2 %349 }
  0xcc   : > { %464 = vrot.lane.b32.xlu1 %v302_v59, %s697_s28 }
  0xcd   : > { %474 = vperm.xlu0 %674, %v737_v0  }
  0xd1   : > { %v348_v12 = vpop.permute.xlu1 %347 }
  0xd2   : > { %v351_v0 = vsel %vm321_vm9, %v348_v12, %v350_v20  ;;  %v354_v33 = vsel %vm321_vm9, %v342_v14, %v348_v12 }
  0xd3   : > { %v360_v27 = vmul.f32 %v773_v28, %v351_v0  ;;  %v359_v40 = vmul.f32 %v773_v28, %v354_v33 }
  0xd4   : > { %561 = vperm.xlu1 %675, %v558_v58  }
  0xd5   : > { %676 = vset.pattern.permute.xlu0 %v686_v2  ;;  %v363_v35 = vrot.slane %v360_v27, 4 }
  0xd9   : > { %v442_v13 = vpop.permute.xlu0 %441 }
  0xf6   : > { %v415_v30 = vpop.permute.xlu2 %414 }
  0xfe   : > { %v454_v45 = vpop.permute.xlu2 %453 }
 0x107   : > { %v316_v16 = vpop.permute.xlu0 %315 }
 0x10e   : > { %v320_v15 = vpop.permute.xlu1 %319 }
 0x10f   : > { %v322_v19 = vsel %vm321_vm9, %v320_v15, %v316_v16  ;;  %v325_v2 = vsel %vm321_vm9, %v316_v16, %v320_v15 }
 0x110   : > { %v331_v21 = vmul.f32 %v771_v25, %v322_v19  ;;  %v330_v29 = vmul.f32 %v771_v25, %v325_v2  ;;  %v364_v25 = vsel %vm335_vm8, %v359_v40, %v363_v35 }
 0x112   : > { %v334_v24 = vrot.slane %v331_v21, 4  ;;  %v500_v21 = vld [vmem:[%s835_s2 + $0x8] sm:$0xff] }
 0x114   : > { %v336_v31 = vsel %vm335_vm8, %v330_v29, %v334_v24 }
 0x115   : > { %v338_v37 = vadd.f32 %v336_v31, %v313_v32 }
 0x116   : > { %v417_v23 = vpop.permute.xlu1 %416  ;;  %v467_v61 = vpop.permute.xlu2 %466 }
 0x117   : > { %v423_v42 = vsel %vm418_vm10, %v417_v23, %v415_v30  ;;  %v366_v46 = vadd.f32 %v364_v25, %v338_v37  ;;  %v419_v28 = vsel %vm418_vm10, %v415_v30, %v417_v23 }
 0x118   : > { %v429_v48 = vmul.f32 %v426_v11, %v423_v42  ;;  %v428_v59 = vmul.f32 %v426_v11, %v419_v28 }
 0x11a   : > { %v432_v55 = vrot.slane %v429_v48, 4 }
 0x11c   : > { %v433_v62 = vsel %vm335_vm8, %v428_v59, %v432_v55 }
 0x12e   : > { %v373_v34 = vpop.permute.xlu1 %372 }
 0x12f   : > { %v369_v36 = vpop.permute.xlu0 %368 }
 0x130   : > { %v374_v38 = vsel %vm321_vm9, %v373_v34, %v369_v36  ;;  %v377_v39 = vsel %vm321_vm9, %v369_v36, %v373_v34 }
 0x131   : > { %v383_v41 = vmul.f32 %v380_v10, %v374_v38  ;;  %v382_v43 = vmul.f32 %v380_v10, %v377_v39 }
 0x133   : > { %v386_v44 = vrot.slane %v383_v41, 4 }
 0x135   : > { %v387_v47 = vsel %vm335_vm8, %v382_v43, %v386_v44 }
 0x136   : > { %v389_v49 = vadd.f32 %v387_v47, %v366_v46  ;;  %v449_v50 = vpop.permute.xlu1 %448 }
 0x137   : > { %v440_v51 = vpop.permute.xlu0 %439  ;;  %v451_v52 = vsel %vm418_vm10, %v442_v13, %v449_v50 }
 0x138   : > { %v401_v53 = vadd.f32 %v399_v9, %v389_v49  ;;  %v457_v54 = vmul.f32 %v454_v45, %v451_v52  ;;  %v443_v57 = vsel %vm418_vm10, %v440_v51, %v442_v13 }
 0x139   : > { %v456_v63 = vmul.f32 %v454_v45, %v443_v57 }
 0x13a   : > { %v413_v56 = vadd.f32 %v411_v8, %v401_v53  ;;  %v460_v60 = vrot.slane %v457_v54, 4 }
 0x13c   : > { %v435_v3 = vadd.f32 %v433_v62, %v413_v56  ;;  %v461_v8 = vsel %vm335_vm8, %v456_v63, %v460_v60 }
 0x13e   : > { %v465_v1 = vpop.permute.xlu1 %464  ;;  %v463_v13 = vadd.f32 %v461_v8, %v435_v3 }
 0x13f   : > { %v475_v5 = vpop.permute.xlu0 %474  ;;  %v468_v6 = vsel %vm418_vm10, %v465_v1, %v467_v61  ;;  %v472_v7 = vsel %vm418_vm10, %v467_v61, %v465_v1 }
 0x140   : > { %v478_v9 = vmul.f32 %v475_v5, %v472_v7  ;;  %v477_v10 = vmul.f32 %v475_v5, %v468_v6 }
 0x142   : > { %v481_v12 = vrot.slane %v478_v9, 4 }
 0x144   : > { %v482_v11 = vsel %vm335_vm8, %v477_v10, %v481_v12 }
 0x145   : > { %v484_v14 = vadd.f32 %v482_v11, %v463_v13 }
 0x146   : > { %v562_v24 = vpop.permute.xlu1 %561 }
 0x147   : > { %486 = vst [vmem:[#allocation1] ss:$2 sm:$0xff] %v484_v14 }
 0x14e   : > { %v487_v15 = vld.sshfl [vmem:[#allocation1] sm:$0xff pattern:$0x75316420]  ;;  %v488_v16 = vld.sshfl [vmem:[#allocation1 + $0x8] sm:$0xff pattern:$0x75316420] }
 0x14f   : > { %492 = vst [vmem:[#allocation1 + $0x1] ss:$2 sm:$0xff] %v748_v4 }
 0x156   : > { %v493_v17 = vld.sshfl [vmem:[#allocation1] sm:$0xff pattern:$0x75316420]  ;;  %v494_v18 = vld.sshfl [vmem:[#allocation1 + $0x8] sm:$0xff pattern:$0x75316420] }
 0x157   : > { %v497_v19 = vsel %vm335_vm8, %v487_v15, %v493_v17  ;;  %v498_v20 = vsel %vm335_vm8, %v488_v16, %v494_v18 }
 0x158   : > { %523 = vmatpush.msra.mxu0 %v497_v19  ;;  %640 = vmatpush.msra.mxu2 %v497_v19 }
 0x159   : > { %546 = vmatpush.msra.mxu1 %v498_v20  ;;  %641 = vmatpush.msra.mxu3 %v498_v20 }
 0x15a   : > { %633 = vmatmul.msk.f32.vlgmr.msra.gmra.mxu2 %vm501_vm11, %v500_v21  ;;  %635 = vmatmul.msk.f32.vlgmr.msra.gmra.mxu3 %vm501_vm11, %v500_v21 }
 0x15b   : > { %632 = vmatmul.msk.f32.vlgmr.msra.gmra.mxu0 %vm501_vm11, %v499_v22  ;;  %634 = vmatmul.msk.f32.vlgmr.msra.gmra.mxu1 %vm501_vm11, %v499_v22 }
 0x1d8   : > { %v525_v4 = vpop.f32.mrf.mxu0  ;;  %v548_v23 = vpop.f32.mrf.mxu1 }
 0x1d9   : > { %v554_v0 = vmax.f32 %v525_v4, 0.0  ;;  %v555_v2 = vmax.f32 %v548_v23, 0.0 }
 0x1dd   : > { %v528_v26 = vpop.f32.mrf.mxu2  ;;  %v551_v27 = vpop.f32.mrf.mxu3 }
 0x1de   : > { %v556_v29 = vadd.f32 %v554_v0, %v528_v26  ;;  %v557_v30 = vadd.f32 %v555_v2, %v551_v27 }
 0x1e0   : > { %v564_v31 = vadd.f32 %v562_v24, %v556_v29  ;;  %v565_v32 = vadd.f32 %v562_v24, %v557_v30 }
 0x1e2   : > { %566 = vst [vmem:[%s197_s12] sm:$0xff] %v564_v31 }
 0x1e3   : > { %567 = vst [vmem:[%s197_s12 + $0x8] sm:$0xff] %v565_v32 }
 0x1e4 PF: > { %s14_s15 = sadd.s32 1, %s683_s15  }
 0x1e5   : > { %p11_p4 = scmp.ge.s32.totalorder %s14_s15, 4  }
 0x1e7   :  { %13 = sbr.rel (!%p11_p4) target bundleno = 1 (0x1), region = 67 }

</bundles_post_ra>
